<compile_context>
chip_gen: v7x
topology: tpu7x:2x2x1
jax: 0.10.0
libtpu: 0.0.40
codegen_flags: <defaults>
</compile_context>

<pallas_src>
import functools

import jax
import jax.numpy as jnp
from jax.experimental import pallas as pl
from jax.experimental.pallas import tpu as pltpu


def _lstm_core_seq_kernel(rnn_size,
                          xt_ref, h0_ref, c0_ref,
                          wi_ref, wh_ref, b_ref,
                          hseq_ref, hlast_ref, clast_ref,
                          h_scr, c_scr):
    """One grid step = one timestep for one batch tile.

    xt_ref : (1, tb, E)  bf16   streamed per step
    h0_ref : (tb, R)     f32    resident per batch tile
    c0_ref : (tb, R)     f32    resident per batch tile
    wi_ref : (E, 5R)     bf16   resident (constant index_map)
    wh_ref : (R, 5R)     bf16   resident (constant index_map)
    b_ref  : (1, 5R)     f32    pre-summed bias, resident
    hseq_ref : (1, tb, R) f32   per-step output (written every step)
    hlast_ref/clast_ref : (tb, R) f32  final state (written at last step)
    h_scr/c_scr : (tb, R) f32 VMEM scratch carrying the recurrent state
    """
    R = rnn_size
    t = pl.program_id(1)

    # Load the initial state into the VMEM-resident recurrence at t == 0.
    @pl.when(t == 0)
    def _():
        h_scr[...] = h0_ref[...]
        c_scr[...] = c0_ref[...]

    xt = xt_ref[0]                    # (tb, E) bf16
    h_prev = h_scr[...]               # (tb, R) f32
    c_prev = c_scr[...]               # (tb, R) f32

    # Fused gate pre-activations: two MXU pushes, one f32 slab, bias added once.
    sums = (jnp.dot(xt, wi_ref[...], preferred_element_type=jnp.float32)
            + jnp.dot(h_prev.astype(jnp.bfloat16), wh_ref[...],
                      preferred_element_type=jnp.float32)
            + b_ref[...])             # (tb, 5R) f32

    sigmoid_chunk = jax.nn.sigmoid(sums[:, :3 * R])
    in_gate = sigmoid_chunk[:, 0 * R:1 * R]
    forget_gate = sigmoid_chunk[:, 1 * R:2 * R]
    out_gate = sigmoid_chunk[:, 2 * R:3 * R]

    in_transform = jnp.maximum(sums[:, 3 * R:4 * R], sums[:, 4 * R:5 * R])

    next_c = forget_gate * c_prev + in_gate * in_transform
    next_h = out_gate * jnp.tanh(next_c)

    # Carry state in f32 VMEM scratch (no HBM round-trip between steps).
    h_scr[...] = next_h
    c_scr[...] = next_c

    # Per-step output (matches LSTMCore's `output = next_h`).
    hseq_ref[0] = next_h.astype(hseq_ref.dtype)

    # Final state, written back only once per batch tile.
    @pl.when(t == pl.num_programs(1) - 1)
    def _():
        hlast_ref[...] = next_h.astype(hlast_ref.dtype)
        clast_ref[...] = next_c.astype(clast_ref.dtype)


def lstm_core_forward_seq(xt_seq, state, params, *, rnn_size, batch_tile=None):
    """Run LSTMCore over a whole sequence in one fused Pallas kernel.

    xt_seq: (T, B, input_encoding_size)
    state:  (h, c) with h, c of shape (1, B, rnn_size)   [PyTorch convention]
    params: w_i2h (E, 5R), b_i2h (1, 5R), w_h2h (R, 5R), b_h2h (1, 5R)
            (linear weights stored pre-transposed: y = x @ W + b)
    Returns (outputs (T, B, R), (next_h[None], next_c[None])).
    """
    T, B, E = xt_seq.shape
    R = rnn_size
    tb = batch_tile if batch_tile is not None else B
    assert B % tb == 0, "batch must be divisible by batch_tile"

    h0 = state[0][-1].astype(jnp.float32)          # (B, R)
    c0 = state[1][-1].astype(jnp.float32)          # (B, R)

    # Parameter prep: bf16 weights (halve HBM bytes, 2x MXU), pre-summed bias.
    wi = params["w_i2h"].astype(jnp.bfloat16)      # (E, 5R)
    wh = params["w_h2h"].astype(jnp.bfloat16)      # (R, 5R)
    bias = (params["b_i2h"] + params["b_h2h"]).astype(jnp.float32)  # (1, 5R)
    xt_bf16 = xt_seq.astype(jnp.bfloat16)          # (T, B, E)

    grid = (B // tb, T)                            # (parallel batch, arbitrary time)
    kernel = functools.partial(_lstm_core_seq_kernel, R)

    h_seq, h_last, c_last = pl.pallas_call(
        kernel,
        grid=grid,
        in_specs=[
            pl.BlockSpec((1, tb, E), lambda b, t: (t, b, 0)),      # xt, streamed
            pl.BlockSpec((tb, R), lambda b, t: (b, 0)),            # h0
            pl.BlockSpec((tb, R), lambda b, t: (b, 0)),            # c0
            pl.BlockSpec((E, 5 * R), lambda b, t: (0, 0)),         # w_i2h resident
            pl.BlockSpec((R, 5 * R), lambda b, t: (0, 0)),         # w_h2h resident
            pl.BlockSpec((1, 5 * R), lambda b, t: (0, 0)),         # bias resident
        ],
        out_specs=(
            pl.BlockSpec((1, tb, R), lambda b, t: (t, b, 0)),      # per-step output
            pl.BlockSpec((tb, R), lambda b, t: (b, 0)),            # final h
            pl.BlockSpec((tb, R), lambda b, t: (b, 0)),            # final c
        ),
        out_shape=(
            jax.ShapeDtypeStruct((T, B, R), jnp.float32),
            jax.ShapeDtypeStruct((B, R), jnp.float32),
            jax.ShapeDtypeStruct((B, R), jnp.float32),
        ),
        scratch_shapes=[
            pltpu.VMEM((tb, R), jnp.float32),   # recurrent h
            pltpu.VMEM((tb, R), jnp.float32),   # recurrent c
        ],
        compiler_params=pltpu.CompilerParams(
            dimension_semantics=("parallel", "arbitrary")),
    )(xt_bf16, h0, c0, wi, wh, bias)

    return h_seq, (h_last[None, ...], c_last[None, ...])


def lstm_core_forward(xt, state, params, *, rnn_size):
    """Single-step API matching LSTMCore.forward(xt, state) exactly."""
    h_seq, new_state = lstm_core_forward_seq(
        xt[None, ...], state, params, rnn_size=rnn_size)
    return h_seq[0], new_state


def _reference_forward_seq(xt_seq, state, params, *, rnn_size):
    """Plain-JAX step-by-step reference mirroring the kernel's precision
    (bf16 matmul inputs, f32 accumulation / gates / state)."""
    R = rnn_size
    wi = params["w_i2h"].astype(jnp.bfloat16)
    wh = params["w_h2h"].astype(jnp.bfloat16)
    bias = (params["b_i2h"] + params["b_h2h"]).astype(jnp.float32)
    h = state[0][-1].astype(jnp.float32)
    c = state[1][-1].astype(jnp.float32)
    outs = []
    for t in range(xt_seq.shape[0]):
        x = xt_seq[t].astype(jnp.bfloat16)
        sums = (jnp.dot(x, wi, preferred_element_type=jnp.float32)
                + jnp.dot(h.astype(jnp.bfloat16), wh,
                          preferred_element_type=jnp.float32)
                + bias)
        sig = jax.nn.sigmoid(sums[:, :3 * R])
        in_g, f_g, o_g = sig[:, :R], sig[:, R:2 * R], sig[:, 2 * R:3 * R]
        in_t = jnp.maximum(sums[:, 3 * R:4 * R], sums[:, 4 * R:5 * R])
        c = f_g * c + in_g * in_t
        h = o_g * jnp.tanh(c)
        outs.append(h)
    return jnp.stack(outs), (h[None], c[None])


if __name__ == "__main__":
    # Small deterministic config; R is a multiple of 128 so gate slices and
    # output stores are lane-dense.
    T = 8
    batch = 8
    input_encoding_size = 128
    rnn_size = 128

    key = jax.random.PRNGKey(0)
    k_xt, k_h, k_c, k_wi, k_bi, k_wh, k_bh = jax.random.split(key, 7)

    xt_seq = jax.random.normal(
        k_xt, (T, batch, input_encoding_size), jnp.float32)
    h0 = jax.random.normal(k_h, (1, batch, rnn_size), jnp.float32)
    c0 = jax.random.normal(k_c, (1, batch, rnn_size), jnp.float32)
    state = (h0, c0)

    params = {
        "w_i2h": 0.1 * jax.random.normal(
            k_wi, (input_encoding_size, 5 * rnn_size), jnp.float32),
        "b_i2h": 0.1 * jax.random.normal(
            k_bi, (1, 5 * rnn_size), jnp.float32),
        "w_h2h": 0.1 * jax.random.normal(
            k_wh, (rnn_size, 5 * rnn_size), jnp.float32),
        "b_h2h": 0.1 * jax.random.normal(
            k_bh, (1, 5 * rnn_size), jnp.float32),
    }

    # Fused-sequence kernel.
    outputs, new_state = lstm_core_forward_seq(
        xt_seq, state, params, rnn_size=rnn_size)
    jax.block_until_ready(outputs)
    jax.block_until_ready(new_state)

    ref_out, ref_state = _reference_forward_seq(
        xt_seq, state, params, rnn_size=rnn_size)

    assert jnp.allclose(outputs, ref_out, atol=2e-3, rtol=2e-3), \
        float(jnp.max(jnp.abs(outputs - ref_out)))
    assert jnp.allclose(new_state[0], ref_state[0], atol=2e-3, rtol=2e-3)
    assert jnp.allclose(new_state[1], ref_state[1], atol=2e-3, rtol=2e-3)

    # Single-step API (exact LSTMCore.forward signature), T = 1 special case.
    step_out, step_state = lstm_core_forward(
        xt_seq[0], state, params, rnn_size=rnn_size)
    jax.block_until_ready(step_out)
    ref_step_out, ref_step_state = _reference_forward_seq(
        xt_seq[:1], state, params, rnn_size=rnn_size)
    assert jnp.allclose(step_out, ref_step_out[0], atol=2e-3, rtol=2e-3)
    assert jnp.allclose(step_state[1], ref_step_state[1], atol=2e-3, rtol=2e-3)

    print("KERNEL_OK")
</pallas_src>

<mosaic_0001>
module attributes {stable_mosaic.version = 11 : i64} {
  func.func @_lstm_core_seq_kernel(%arg0: i32, %arg1: i32, %arg2: memref<1x8x128xbf16, #tpu.memory_space<vmem>>, %arg3: memref<8x128xf32, #tpu.memory_space<vmem>>, %arg4: memref<8x128xf32, #tpu.memory_space<vmem>>, %arg5: memref<128x640xbf16, #tpu.memory_space<vmem>>, %arg6: memref<128x640xbf16, #tpu.memory_space<vmem>>, %arg7: memref<1x640xf32, #tpu.memory_space<vmem>>, %arg8: memref<1x8x128xf32, #tpu.memory_space<vmem>>, %arg9: memref<8x128xf32, #tpu.memory_space<vmem>>, %arg10: memref<8x128xf32, #tpu.memory_space<vmem>>, %arg11: memref<8x128xf32, #tpu.memory_space<vmem>>, %arg12: memref<8x128xf32, #tpu.memory_space<vmem>>) attributes {dimension_semantics = [#tpu.dimension_semantics<parallel>, #tpu.dimension_semantics<arbitrary>], iteration_bounds = array<i64: 1, 8>, scalar_prefetch = 0 : i64, scratch_operands = 2 : i64, tpu.core_type = #tpu.core_type<tc>, window_params = [{transform_indices = @transform_0, window_bounds = array<i64: 1, 8, 128>}, {transform_indices = @transform_1, window_bounds = array<i64: 8, 128>}, {transform_indices = @transform_2, window_bounds = array<i64: 8, 128>}, {pipeline_mode = #tpu.pipeline_mode<synchronous>, transform_indices = @transform_3, window_bounds = array<i64: 128, 640>}, {pipeline_mode = #tpu.pipeline_mode<synchronous>, transform_indices = @transform_4, window_bounds = array<i64: 128, 640>}, {pipeline_mode = #tpu.pipeline_mode<synchronous>, transform_indices = @transform_5, window_bounds = array<i64: 1, 640>}, {transform_indices = @transform_6, window_bounds = array<i64: 1, 8, 128>}, {transform_indices = @transform_7, window_bounds = array<i64: 8, 128>}, {transform_indices = @transform_8, window_bounds = array<i64: 8, 128>}]} {
    %c0_i32 = arith.constant 0 : i32
    %0 = arith.cmpi eq, %arg1, %c0_i32 : i32
    %1 = arith.extui %0 : i1 to i32
    %c0_i32_0 = arith.constant 0 : i32
    %2 = arith.cmpi ne, %1, %c0_i32_0 : i32
    scf.if %2 {
      %c0_23 = arith.constant 0 : index
      %c0_24 = arith.constant 0 : index
      %41 = vector.load %arg3[%c0_23, %c0_24] : memref<8x128xf32, #tpu.memory_space<vmem>>, vector<8x128xf32>
      %c0_25 = arith.constant 0 : index
      %c0_26 = arith.constant 0 : index
      %42 = vector.load %arg11[%c0_25, %c0_26] : memref<8x128xf32, #tpu.memory_space<vmem>>, vector<8x128xf32>
      tpu.vector_store %arg11[%c0_25, %c0_26], %41 {strides = array<i32>} : memref<8x128xf32, #tpu.memory_space<vmem>>, vector<8x128xf32>,
      %c0_27 = arith.constant 0 : index
      %c0_28 = arith.constant 0 : index
      %43 = vector.load %arg4[%c0_27, %c0_28] : memref<8x128xf32, #tpu.memory_space<vmem>>, vector<8x128xf32>
      %c0_29 = arith.constant 0 : index
      %c0_30 = arith.constant 0 : index
      %44 = vector.load %arg12[%c0_29, %c0_30] : memref<8x128xf32, #tpu.memory_space<vmem>>, vector<8x128xf32>
      tpu.vector_store %arg12[%c0_29, %c0_30], %43 {strides = array<i32>} : memref<8x128xf32, #tpu.memory_space<vmem>>, vector<8x128xf32>,
    } else {
    }
    %c0 = arith.constant 0 : index
    %c0_1 = arith.constant 0 : index
    %c0_2 = arith.constant 0 : index
    %3 = vector.load %arg2[%c0, %c0_1, %c0_2] : memref<1x8x128xbf16, #tpu.memory_space<vmem>>, vector<1x8x128xbf16>
    %4 = vector.shape_cast %3 : vector<1x8x128xbf16> to vector<8x128xbf16>
    %c0_3 = arith.constant 0 : index
    %c0_4 = arith.constant 0 : index
    %5 = vector.load %arg11[%c0_3, %c0_4] : memref<8x128xf32, #tpu.memory_space<vmem>>, vector<8x128xf32>
    %c0_5 = arith.constant 0 : index
    %c0_6 = arith.constant 0 : index
    %6 = vector.load %arg12[%c0_5, %c0_6] : memref<8x128xf32, #tpu.memory_space<vmem>>, vector<8x128xf32>
    %c0_7 = arith.constant 0 : index
    %c0_8 = arith.constant 0 : index
    %7 = vector.load %arg5[%c0_7, %c0_8] : memref<128x640xbf16, #tpu.memory_space<vmem>>, vector<128x640xbf16>
    %cst = arith.constant dense<0.000000e+00> : vector<8x640xf32>
    %8 = tpu.matmul %4, %7, %cst {dimension_numbers = #tpu.dot_dimension_numbers<[1], [0], [0], [1], [0, 0, 1, 1], [], []>} : vector<8x128xbf16>, vector<128x640xbf16>, vector<8x640xf32> -> vector<8x640xf32>
    %9 = arith.truncf %5 : vector<8x128xf32> to vector<8x128xbf16>
    %c0_9 = arith.constant 0 : index
    %c0_10 = arith.constant 0 : index
    %10 = vector.load %arg6[%c0_9, %c0_10] : memref<128x640xbf16, #tpu.memory_space<vmem>>, vector<128x640xbf16>
    %cst_11 = arith.constant dense<0.000000e+00> : vector<8x640xf32>
    %11 = tpu.matmul %9, %10, %cst_11 {dimension_numbers = #tpu.dot_dimension_numbers<[1], [0], [0], [1], [0, 0, 1, 1], [], []>} : vector<8x128xbf16>, vector<128x640xbf16>, vector<8x640xf32> -> vector<8x640xf32>
    %12 = arith.addf %8, %11 : vector<8x640xf32>
    %c0_12 = arith.constant 0 : index
    %c0_13 = arith.constant 0 : index
    %13 = vector.load %arg7[%c0_12, %c0_13] : memref<1x640xf32, #tpu.memory_space<vmem>>, vector<1x640xf32>
    %14 = vector.broadcast %13 : vector<1x640xf32> to vector<8x640xf32>
    %15 = arith.addf %12, %14 : vector<8x640xf32>
    %16 = vector.extract_strided_slice %15 {offsets = [0, 0], sizes = [8, 384], strides = [1, 1]} : vector<8x640xf32> to vector<8x384xf32>
    %17 = arith.negf %16 : vector<8x384xf32>
    %18 = math.exp %17 : vector<8x384xf32>
    %cst_14 = arith.constant 1.000000e+00 : f32
    %19 = vector.broadcast %cst_14 : f32 to vector<8x384xf32>
    %20 = arith.addf %19, %18 : vector<8x384xf32>
    %21 = arith.divf %19, %20 : vector<8x384xf32>
    %22 = vector.extract_strided_slice %21 {offsets = [0, 0], sizes = [8, 128], strides = [1, 1]} : vector<8x384xf32> to vector<8x128xf32>
    %23 = vector.extract_strided_slice %21 {offsets = [0, 128], sizes = [8, 128], strides = [1, 1]} : vector<8x384xf32> to vector<8x128xf32>
    %24 = vector.extract_strided_slice %21 {offsets = [0, 256], sizes = [8, 128], strides = [1, 1]} : vector<8x384xf32> to vector<8x128xf32>
    %25 = vector.extract_strided_slice %15 {offsets = [0, 384], sizes = [8, 128], strides = [1, 1]} : vector<8x640xf32> to vector<8x128xf32>
    %26 = vector.extract_strided_slice %15 {offsets = [0, 512], sizes = [8, 128], strides = [1, 1]} : vector<8x640xf32> to vector<8x128xf32>
    %27 = arith.maximumf %25, %26 : vector<8x128xf32>
    %28 = arith.mulf %23, %6 : vector<8x128xf32>
    %29 = arith.mulf %22, %27 : vector<8x128xf32>
    %30 = arith.addf %28, %29 : vector<8x128xf32>
    %31 = math.tanh %30 : vector<8x128xf32>
    %32 = arith.mulf %24, %31 : vector<8x128xf32>
    %c0_15 = arith.constant 0 : index
    %c0_16 = arith.constant 0 : index
    %33 = vector.load %arg11[%c0_15, %c0_16] : memref<8x128xf32, #tpu.memory_space<vmem>>, vector<8x128xf32>
    tpu.vector_store %arg11[%c0_15, %c0_16], %32 {strides = array<i32>} : memref<8x128xf32, #tpu.memory_space<vmem>>, vector<8x128xf32>,
    %c0_17 = arith.constant 0 : index
    %c0_18 = arith.constant 0 : index
    %34 = vector.load %arg12[%c0_17, %c0_18] : memref<8x128xf32, #tpu.memory_space<vmem>>, vector<8x128xf32>
    tpu.vector_store %arg12[%c0_17, %c0_18], %30 {strides = array<i32>} : memref<8x128xf32, #tpu.memory_space<vmem>>, vector<8x128xf32>,
    %c0_19 = arith.constant 0 : index
    %c0_20 = arith.constant 0 : index
    %c0_21 = arith.constant 0 : index
    %35 = vector.load %arg8[%c0_19, %c0_20, %c0_21] : memref<1x8x128xf32, #tpu.memory_space<vmem>>, vector<1x8x128xf32>
    %36 = vector.shape_cast %35 : vector<1x8x128xf32> to vector<8x128xf32>
    %37 = vector.shape_cast %32 : vector<8x128xf32> to vector<1x8x128xf32>
    tpu.vector_store %arg8[%c0_19, %c0_20, %c0_21], %37 {strides = array<i32>} : memref<1x8x128xf32, #tpu.memory_space<vmem>>, vector<1x8x128xf32>,
    %c7_i32 = arith.constant 7 : i32
    %38 = arith.cmpi eq, %arg1, %c7_i32 : i32
    %39 = arith.extui %38 : i1 to i32
    %c0_i32_22 = arith.constant 0 : i32
    %40 = arith.cmpi ne, %39, %c0_i32_22 : i32
    scf.if %40 {
      %c0_23 = arith.constant 0 : index
      %c0_24 = arith.constant 0 : index
      %41 = vector.load %arg9[%c0_23, %c0_24] : memref<8x128xf32, #tpu.memory_space<vmem>>, vector<8x128xf32>
      tpu.vector_store %arg9[%c0_23, %c0_24], %32 {strides = array<i32>} : memref<8x128xf32, #tpu.memory_space<vmem>>, vector<8x128xf32>,
      %c0_25 = arith.constant 0 : index
      %c0_26 = arith.constant 0 : index
      %42 = vector.load %arg10[%c0_25, %c0_26] : memref<8x128xf32, #tpu.memory_space<vmem>>, vector<8x128xf32>
      tpu.vector_store %arg10[%c0_25, %c0_26], %30 {strides = array<i32>} : memref<8x128xf32, #tpu.memory_space<vmem>>, vector<8x128xf32>,
    } else {
    }
    return
  }
  func.func @transform_0(%arg0: i32, %arg1: i32) -> (i32, i32, i32) {
    %c0_i32 = arith.constant 0 : i32
    %c0_i32_0 = arith.constant 0 : i32
    return %arg1, %arg0, %c0_i32 : i32, i32, i32
  }
  func.func @transform_1(%arg0: i32, %arg1: i32) -> (i32, i32) {
    %c0_i32 = arith.constant 0 : i32
    %c0_i32_0 = arith.constant 0 : i32
    return %arg0, %c0_i32 : i32, i32
  }
  func.func @transform_2(%arg0: i32, %arg1: i32) -> (i32, i32) {
    %c0_i32 = arith.constant 0 : i32
    %c0_i32_0 = arith.constant 0 : i32
    return %arg0, %c0_i32 : i32, i32
  }
  func.func @transform_3(%arg0: i32, %arg1: i32) -> (i32, i32) {
    %c0_i32 = arith.constant 0 : i32
    %c0_i32_0 = arith.constant 0 : i32
    %c0_i32_1 = arith.constant 0 : i32
    return %c0_i32, %c0_i32_0 : i32, i32
  }
  func.func @transform_4(%arg0: i32, %arg1: i32) -> (i32, i32) {
    %c0_i32 = arith.constant 0 : i32
    %c0_i32_0 = arith.constant 0 : i32
    %c0_i32_1 = arith.constant 0 : i32
    return %c0_i32, %c0_i32_0 : i32, i32
  }
  func.func @transform_5(%arg0: i32, %arg1: i32) -> (i32, i32) {
    %c0_i32 = arith.constant 0 : i32
    %c0_i32_0 = arith.constant 0 : i32
    %c0_i32_1 = arith.constant 0 : i32
    return %c0_i32, %c0_i32_0 : i32, i32
  }
  func.func @transform_6(%arg0: i32, %arg1: i32) -> (i32, i32, i32) {
    %c0_i32 = arith.constant 0 : i32
    %c0_i32_0 = arith.constant 0 : i32
    return %arg1, %arg0, %c0_i32 : i32, i32, i32
  }
  func.func @transform_7(%arg0: i32, %arg1: i32) -> (i32, i32) {
    %c0_i32 = arith.constant 0 : i32
    %c0_i32_0 = arith.constant 0 : i32
    return %arg0, %c0_i32 : i32, i32
  }
  func.func @transform_8(%arg0: i32, %arg1: i32) -> (i32, i32) {
    %c0_i32 = arith.constant 0 : i32
    %c0_i32_0 = arith.constant 0 : i32
    return %arg0, %c0_i32 : i32, i32
  }
}

</mosaic_0001>

<bundles_post_ra>
// kernel: tpu_custom_call.1
= control target key start
LH: loop header
LB: loop body
LE: loop exit
PB: predicated region body
PF: predicated region fallthrough
CT: control target
= control target key end

     0   :  { %s2572_s0 = inlined_call_operand.hbm [shape: bf16[8,8,128], index: 0, kind: input, shape index: {}]   ;;  %s2573_s1 = inlined_call_operand.hbm [shape: f32[8,128], index: 1, kind: input, shape index: {}]   ;;  %s2574_s2 = inlined_call_operand.hbm [shape: f32[8,128], index: 2, kind: input, shape index: {}]   ;;  %s2575_s3 = inlined_call_operand.hbm [shape: bf16[128,640], index: 3, kind: input, shape index: {}]   ;;  %s2576_s4 = inlined_call_operand.hbm [shape: bf16[128,640], index: 4, kind: input, shape index: {}]   ;;  %s2577_s5 = inlined_call_operand.vmem [shape: f32[1,640], index: 5, kind: input, shape index: {}]   ;;  %s2578_s6 = inlined_call_operand.hbm [shape: f32[8,8,128], index: 6, kind: output, shape index: {0}]   ;;  %s2579_s7 = inlined_call_operand.hbm [shape: f32[8,128], index: 7, kind: output, shape index: {1}]   ;;  %s2580_s8 = inlined_call_operand.hbm [shape: f32[8,128], index: 8, kind: output, shape index: {2}]  }
   0x1   :  { %2589 = sst [smem:[#allocation22_spill]] %s2573_s1 }
   0x2   :  { %2590 = sst [smem:[#allocation23_spill]] %s2574_s2 }
   0x3   :  { %2591 = sst [smem:[#allocation24_spill]] %s2575_s3 }
   0x4   :  { %2592 = sst [smem:[#allocation25_spill]] %s2576_s4 }
   0x5   :  { %14 = vsyncpa [#allocation5], 0 }
   0x6   :  { %16 = vsyncpa [#allocation5 + $0x1], 0 }
   0x7   :  { %17 = vsyncpa [#allocation8], 0 }
   0x8   :  { %18 = vsyncpa [#allocation11], 0 }
   0x9   :  { %19 = vsyncpa [#allocation6], 0 }
   0xa   :  { %21 = vsyncpa [#allocation6 + $0x1], 0 }
   0xb   :  { %22 = vsyncpa [#allocation15], 0  ;;  %s2198_s27 = smov 0   ;;  %s2200_s28 = smov 0  }
   0xc   :  { %s2202_s29 = smov 0   ;;  %s2204_s30 = smov 0  }
   0xd   :  { %s2206_s9 = smov 0   ;;  %s2208_s10 = smov 0  }
   0xe LB: > { %s2584_s11 = sadd.s32 4294967295, %s2138_s10   ;;  %p1436_p0 = scmp.ge.s32.totalorder %s2138_s10, 1  ;;  %s2138_s10 = sphi %s2208_s10, %s28_s10   ;;  %s2134_s9 = sphi %s2206_s9, %s2619_s9   ;;  %s2130_s30 = sphi %s2204_s30, %s2618_s30   ;;  %s2126_s29 = sphi %s2202_s29, %s2617_s29   ;;  %s2122_s28 = sphi %s2200_s28, %s2616_s28   ;;  %s2118_s27 = sphi %s2198_s27, %s2615_s27  }
   0xf   : > { %p2232_p1 = scmp.eq.s32.totalorder %s2584_s11, 0  ;;  %p268_p2 = scmp.lt.s32.totalorder %s2138_s10, 9 }
  0x10   : > { %s2140_s14 = smov [#allocation7]   ;;  %s2141_s16 = smov [#allocation10]  }
  0x11   : > { %s2593_s12 = scalar_select %p2232_p1, 1, 0 }
  0x12   : > { %p2237_p3 = pnand %p1436_p0, %p268_p2  ;;  %s283_s15 = sshll.u32 %s2140_s14, 4  ;;  %s284_s15 = int_to_ptr.vmem [resolvable:$true] %s283_s15 }
  0x13   : > { %s306_s17 = sshll.u32 %s2141_s16, 4  ;;  %s2142_s19 = smov [#allocation9]   ;;  %s2249_s17 = int_to_ptr.vmem [resolvable:$true] %s306_s17 }
  0x14   : > { %s2594_s13 = scalar_select %p2237_p3, 1, 0 }
  0x15   : > { %p1630_p4 = pneg %p2237_p3  ;;  %s2251_s20 = sshll.u32 %s2142_s19, 4  ;;  %s297_s20 = int_to_ptr.vmem [resolvable:$true] %s2251_s20 }
  0x16   : > { %s2596_s1 = sld [smem:[#allocation22_spill]] }
  0x17   : > { %p2245_p5 = pnand %p1630_p4, %p2232_p1 }
  0x19   : > { %p2261_p7 = pneg %p2245_p5 }
  0x1c   : > { %s1850_s23 = scalar_lea.hbm %s2596_s1, 128 }
  0x1d   : > { %p1851_p6 = scmp.ne.s32.totalorder %s2596_s1, %s1850_s23  ;;  %p1857_p10 = scmp.lt.u32.totalorder %s1850_s23, %s2596_s1 }
  0x1f   : > { %p1853_p8 = pnand %p2261_p7, %p1851_p6 }
  0x21   : > { %p1854_p9 = pneg %p1853_p8 }
  0x23   : > { %p1859_p11 = pnand %p1857_p10, %p1854_p9 }
  0x25   : > { %1862 = shalt.err (!%p1859_p11)
}
  0x26   : > { %s1863_s19 = scalar_lea.vmem %s284_s15, 128  ;;  %p1871_p2 = scmp.lt.s32.totalorder %s284_s15, %s284_s15 }
  0x27   : > { %p1864_p12 = scmp.ne.s32.totalorder %s284_s15, %s1863_s19  ;;  %p1872_p4 = scmp.lt.s32.totalorder %s1863_s19, %s1863_s19 }
  0x29   : > { %p1866_p13 = pnand %p1864_p12, %p2261_p7  ;;  %p1873_p3 = por %p1872_p4, %p1871_p2 }
  0x2b   : > { %p1867_p0 = pneg %p1866_p13 }
  0x2d   : > { %p1874_p1 = pnand %p1873_p3, %p1867_p0 }
  0x2f   : > { %1877 = shalt.err (!%p1874_p1)
}
  0x30   : > { %1633 = dma.hbm_to_vmem [thread:$0]  (!%p2245_p5), %s2596_s1, 128, %s284_s15, [#allocation8]  }
  0x31   : > { %s2598_s3 = sld [smem:[#allocation24_spill]] }
  0x37   : > { %s1878_s25 = scalar_lea.hbm %s2598_s3, 5120 }
  0x38   : > { %p1879_p6 = scmp.ne.s32.totalorder %s2598_s3, %s1878_s25  ;;  %p1885_p1 = scmp.lt.u32.totalorder %s1878_s25, %s2598_s3 }
  0x3a   : > { %p1881_p8 = pnand %p1879_p6, %p2261_p7 }
  0x3c   : > { %p1882_p9 = pneg %p1881_p8 }
  0x3e   : > { %p1887_p3 = pnand %p1885_p1, %p1882_p9 }
  0x40   : > { %1890 = shalt.err (!%p1887_p3)
}
  0x41   : > { %s1891_s15 = scalar_lea.vmem %s2249_s17, 5120  ;;  %p1899_p13 = scmp.lt.s32.totalorder %s2249_s17, %s2249_s17 }
  0x42   : > { %p1892_p10 = scmp.ne.s32.totalorder %s2249_s17, %s1891_s15  ;;  %p1900_p0 = scmp.lt.s32.totalorder %s1891_s15, %s1891_s15 }
  0x44   : > { %p1894_p11 = pnand %p1892_p10, %p2261_p7  ;;  %p1901_p2 = por %p1900_p0, %p1899_p13 }
  0x46   : > { %p1895_p12 = pneg %p1894_p11 }
  0x48   : > { %p1902_p4 = pnand %p1901_p2, %p1895_p12 }
  0x4a   : > { %1905 = shalt.err (!%p1902_p4)
}
  0x4b   : > { %s2585_s21 = smov 320   ;;  %s2144_s11 = smov 20  }
  0x4c   : > { %1639 = dma.hbm_to_vmem [thread:$0]  (!%p2245_p5), %s2598_s3, 5120, %s2249_s17, [#allocation11], %s2585_s21, %s2585_s21, %s2144_s11  }
  0x4d   : > { %s2599_s2 = sld [smem:[#allocation23_spill]] }
  0x53   : > { %s1906_s14 = scalar_lea.hbm %s2599_s2, 128 }
  0x54   : > { %p1907_p6 = scmp.ne.s32.totalorder %s2599_s2, %s1906_s14  ;;  %p1913_p1 = scmp.lt.u32.totalorder %s1906_s14, %s2599_s2 }
  0x56   : > { %p1909_p8 = pnand %p1907_p6, %p2261_p7 }
  0x58   : > { %p1910_p9 = pneg %p1909_p8 }
  0x5a   : > { %p1915_p3 = pnand %p1913_p1, %p1910_p9 }
  0x5c   : > { %1918 = shalt.err (!%p1915_p3)
}
  0x5d   : > { %s1919_s22 = scalar_lea.vmem %s297_s20, 128  ;;  %p1927_p13 = scmp.lt.s32.totalorder %s297_s20, %s297_s20 }
  0x5e   : > { %p1920_p10 = scmp.ne.s32.totalorder %s297_s20, %s1919_s22  ;;  %p1928_p0 = scmp.lt.s32.totalorder %s1919_s22, %s1919_s22 }
  0x60   : > { %p1922_p11 = pnand %p1920_p10, %p2261_p7  ;;  %p1929_p2 = por %p1928_p0, %p1927_p13 }
  0x62   : > { %p1923_p12 = pneg %p1922_p11 }
  0x64   : > { %p1930_p4 = pnand %p1929_p2, %p1923_p12 }
  0x66   : > { %1933 = shalt.err (!%p1930_p4)
}
  0x67   : > { %1636 = dma.hbm_to_vmem [thread:$0]  (!%p2245_p5), %s2599_s2, 128, %s297_s20, [#allocation8]  }
  0x68   : > { %s2145_s1 = smov [#allocation12]   ;;  %s2600_s4 = sld [smem:[#allocation25_spill]] }
  0x69   : > { %s319_s24 = sshll.u32 %s2145_s1, 4  ;;  %s320_s24 = int_to_ptr.vmem [resolvable:$true] %s319_s24 }
  0x6e   : > { %s1934_s16 = scalar_lea.hbm %s2600_s4, 5120 }
  0x6f   : > { %p1935_p6 = scmp.ne.s32.totalorder %s2600_s4, %s1934_s16  ;;  %p1941_p1 = scmp.lt.u32.totalorder %s1934_s16, %s2600_s4 }
  0x71   : > { %p1937_p8 = pnand %p1935_p6, %p2261_p7 }
  0x73   : > { %p1938_p9 = pneg %p1937_p8 }
  0x75   : > { %p1943_p3 = pnand %p1941_p1, %p1938_p9 }
  0x77   : > { %1946 = shalt.err (!%p1943_p3)
}
  0x78   : > { %s1947_s20 = scalar_lea.vmem %s320_s24, 5120  ;;  %p1955_p13 = scmp.lt.s32.totalorder %s320_s24, %s320_s24 }
  0x79   : > { %p1948_p10 = scmp.ne.s32.totalorder %s320_s24, %s1947_s20  ;;  %p1956_p0 = scmp.lt.s32.totalorder %s1947_s20, %s1947_s20 }
  0x7b   : > { %p1950_p11 = pnand %p1948_p10, %p2261_p7  ;;  %p1957_p2 = por %p1956_p0, %p1955_p13 }
  0x7d   : > { %p1951_p12 = pneg %p1950_p11 }
  0x7f   : > { %p1958_p4 = pnand %p1957_p2, %p1951_p12 }
  0x81   : > { %1961 = shalt.err (!%p1958_p4)
}
  0x82   : > { %s2601_s17 = smov 320   ;;  %s1435_s18 = sadd.s32 4294967294, %s2138_s10  }
  0x83   : > { %1642 = dma.hbm_to_vmem [thread:$0]  (!%p2245_p5), %s2600_s4, 5120, %s320_s24, [#allocation11], %s2601_s17, %s2601_s17, %s2144_s11  }
  0x84   : > { %s37_s26 = sadd.s32 1, %s2134_s9  ;;  %s49_s1 = sadd.s32 1, %s2126_s29 }
  0x85   : > { %p38_p7 = scmp.ge.s32.totalorder %s37_s26, 8  ;;  %p56_p6 = scmp.ne.s32.totalorder %s2126_s29, %s2122_s28 }
  0x86   : > { %p57_p8 = scmp.eq.s32.totalorder %s2138_s10, 0  ;;  %p62_p1 = scmp.ne.s32.totalorder %s2122_s28, %s2118_s27 }
  0x87   : > { %s2621_s26 = smov (%p38_p7, %s37_s26), 0  ;;  %s2603_s24 = sadd.s32 4294967295, %s2138_s10  }
  0x88   : > { %p2351_p9 = por %p57_p8, %p56_p6  ;;  %s44_s11 = ssub.s32 %s2134_s9, %s2621_s26 }
  0x89   : > { %p2361_p5 = scmp.eq.s32.totalorder %s2603_s24, 7  ;;  %p47_p3 = scmp.eq.s32.totalorder %s44_s11, 0 }
  0x8a   : > { %p2605_p10 = scmp.ne.s32.totalorder %s2593_s12, 0  ;;  %p209_p13 = scmp.eq.s32.totalorder %s1435_s18, 7 }
  0x8b   : > { %s2604_s14 = scalar_select %p2361_p5, 1, 0 }
  0x8c   : > { %p2367_p11 = por %p2605_p10, %p62_p1  ;;  %p2373_p12 = por %p2361_p5, %p56_p6 }
  0x8d   : > { %s2378_s15 = scalar_select %p47_p3, %s2126_s29, %s49_s1  }
  0x8e   : > { %s2607_s19 = scalar_select %p2373_p12, 1, 0 }
  0x8f   : > { %p2380_p0 = por %p209_p13, %p62_p1  ;;  %p1655_p2 = scmp.lt.s32.totalorder %s2138_s10, 8 }
  0x90   : > { %s336_s20 = sand.u32 1, %s2126_s29   ;;  %s1443_s17 = sshll.u32 %s2134_s9, 6 }
  0x91   : > { %s2608_s22 = scalar_select %p2380_p0, 1, 0 }
  0x92   : > { %s1442_s21 = sshll.u32 %s336_s20, 2  ;;  %s2390_s24 = scalar_lea.hbm %s2572_s0, %s1443_s17 }
  0x93   : > { %s340_s18 = scalar_lea.vmem [#allocation4], %s1442_s21  ;;  %p2394_p4 = pnand %p1655_p2, %p2351_p9 }
  0x94   : > { %s348_s1 = sshll.u32 %s340_s18, 4  ;;  %s337_s3 = scalar_lea.sflag [#allocation5], %s336_s20  ;;  %s2398_s1 = int_to_ptr.vmem [resolvable:$true] %s348_s1 }
  0x95   : > { %s1962_s4 = scalar_lea.hbm %s2390_s24, 64  ;;  %p1964_p6 = pneg %p2394_p4 }
  0x96   : > { %p1963_p7 = scmp.ne.s32.totalorder %s2390_s24, %s1962_s4  ;;  %s1967_s25 = scalar_lea.hbm %s2572_s0, 512 }
  0x97   : > { %p1968_p9 = scmp.lt.u32.totalorder %s2390_s24, %s2572_s0  ;;  %p1969_p3 = scmp.lt.u32.totalorder %s1967_s25, %s1962_s4 }
  0x98   : > { %p1965_p8 = pnand %p1964_p6, %p1963_p7  ;;  %p1971_p13 = scmp.lt.u32.totalorder %s1962_s4, %s2390_s24 }
  0x99   : > { %p1970_p10 = por %p1969_p3, %p1968_p9 }
  0x9a   : > { %p1966_p1 = pneg %p1965_p8 }
  0x9b   : > { %p1972_p2 = por %p1971_p13, %p1970_p10 }
  0x9d   : > { %p1973_p0 = pnand %p1972_p2, %p1966_p1 }
  0x9f   : > { %1976 = shalt.err (!%p1973_p0)
}
  0xa0   : > { %s1977_s20 = scalar_lea.vmem %s2398_s1, 64  ;;  %s2146_s18 = smov [#allocation4]  }
  0xa1   : > { %p1978_p7 = scmp.ne.s32.totalorder %s2398_s1, %s1977_s20  ;;  %s1982_s17 = sshll.u32 %s2146_s18, 4  ;;  %s1983_s17 = int_to_ptr.vmem [resolvable:$false] %s1982_s17 }
  0xa2   : > { %s1984_s21 = scalar_lea.vmem %s1983_s17, 128  ;;  %p1985_p5 = scmp.lt.s32.totalorder %s2398_s1, %s1983_s17 }
  0xa3   : > { %p1980_p8 = pnand %p1978_p7, %p1964_p6  ;;  %p1986_p9 = scmp.lt.s32.totalorder %s1984_s21, %s1977_s20 }
  0xa5   : > { %p1981_p12 = pneg %p1980_p8  ;;  %p1987_p3 = por %p1986_p9, %p1985_p5 }
  0xa7   : > { %p1988_p10 = pnand %p1987_p3, %p1981_p12 }
  0xa9   : > { %1991 = shalt.err (!%p1988_p10)
}
  0xaa   : > { %1646 = dma.hbm_to_vmem [thread:$0]  (!%p2394_p4), %s2390_s24, 64, %s2398_s1, %s337_s3  }
  0xab   : > { %p2610_p0 = scmp.ne.s32.totalorder %s2594_s13, 0 }
  0xac   : > { %s2428_s4 = sand.u32 (!%p2610_p0), 1, %s2122_s28  }
  0xad   : > { %357 = sbr.rel (%p2610_p0) target bundleno = 612 (0x264), region = 44  ;;  %s1445_s25 = sshll.u32 (!%p2610_p0), %s2428_s4, 2 }
  0xae   : > { %s360_s23 = scalar_lea.sflag (!%p2610_p0), [#allocation5], %s2428_s4  ;;  %s2432_s11 = scalar_lea.vmem (!%p2610_p0), [#allocation4], %s1445_s25 }
  0xb4   : > { %2097 = dma.done.wait (%p2367_p11), %s360_s23, 64  }
  0xb5   : > { %2099 = vsyncadd (%p2367_p11), %s360_s23, 4294967232  ;;  %p2611_p5 = scmp.ne.s32.totalorder %s2593_s12, 0 }
  0xb7   : > { %2101 = dma.done.wait (%p2611_p5), [#allocation8], 256  }
  0xb8   : > { %2103 = vsyncadd (%p2611_p5), [#allocation8], 4294967040 }
  0xb9   : > { %2105 = dma.done.wait (%p2611_p5), [#allocation11], 10240  }
  0xba   : > { %2107 = vsyncadd (%p2611_p5), [#allocation11], 4294957056  ;;  %s1450_s2 = sshll.u32 %s2428_s4, 3  ;;  %p1451_p12 = scmp.ne.s32.totalorder %s2130_s30, 0 }
  0xbb   : > { %s2447_s3 = scalar_lea.vmem [#allocation13], %s1450_s2  ;;  %v417_v0 = vld [vmem:[#allocation7] sm:$0xff] (!%p1451_p12)  ;;  %v419_v1 = vld [vmem:[#allocation9] sm:$0xff] (!%p1451_p12) }
  0xbc   : > { %416 = sbr.rel (%p1451_p12) target bundleno = 195 (0xc3), region = 68  ;;  %418 = vst [vmem:[#allocation2] sm:$0xff] (!%p1451_p12), %v417_v0  ;;  %420 = vst [vmem:[#allocation3] sm:$0xff] (!%p1451_p12), %v419_v1 }
  0xc3 PF: > { %v1724_v2 = vld [vmem:[#allocation12 + $0x4] ss:$20 sps:$4 sm:$0xff]   ;;  %v1726_v3 = vld [vmem:[#allocation12 + $0xc] ss:$20 sps:$4 sm:$0xff]   ;;  %v2147_v4 = vmov 0   ;;  %v2148_v40 = vmov 0.0  }
  0xc4   : > { %761 = vmatprep.mubr.bf16.mxu0 %v2147_v4  ;;  %802 = vmatprep.mubr.bf16.mxu1 %v2147_v4  ;;  %v1728_v5 = vld [vmem:[#allocation12] ss:$20 sps:$4 sm:$0xff]   ;;  %v1729_v6 = vld [vmem:[#allocation12 + $0x8] ss:$20 sps:$4 sm:$0xff]   ;;  %v1735_v10 = vld [vmem:[#allocation12 + $0x30] ss:$20 sps:$4 sm:$0xff]  }
  0xc5   : > { %729 = vmatprep.subr.bf16.mxu0 %v1724_v2  ;;  %770 = vmatprep.subr.bf16.mxu1 %v1726_v3  ;;  %v1730_v7 = vld [vmem:[#allocation12 + $0x2c] ss:$20 sps:$4 sm:$0xff]   ;;  %v1732_v8 = vld [vmem:[#allocation12 + $0x34] ss:$20 sps:$4 sm:$0xff]   ;;  %v1738_v12 = vld [vmem:[#allocation12 + $0x5c] ss:$20 sps:$4 sm:$0xff]  }
  0xc6   : > { %730 = vmatpush1.bf16.msra.mxu0 %v1728_v5  ;;  %771 = vmatpush1.bf16.msra.mxu1 %v1729_v6  ;;  %v1734_v9 = vld [vmem:[#allocation12 + $0x28] ss:$20 sps:$4 sm:$0xff]   ;;  %v1740_v13 = vld [vmem:[#allocation12 + $0x50] ss:$20 sps:$4 sm:$0xff]   ;;  %v1741_v14 = vld [vmem:[#allocation12 + $0x58] ss:$20 sps:$4 sm:$0xff]  }
  0xc7   : > { %731 = vmatprep.subr.bf16.mxu0 %v1730_v7  ;;  %772 = vmatprep.subr.bf16.mxu1 %v1732_v8  ;;  %v1736_v11 = vld [vmem:[#allocation12 + $0x54] ss:$20 sps:$4 sm:$0xff]   ;;  %v1742_v15 = vld [vmem:[#allocation12 + $0x7c] ss:$20 sps:$4 sm:$0xff]   ;;  %v1744_v16 = vld [vmem:[#allocation12 + $0x84] ss:$20 sps:$4 sm:$0xff]  }
  0xc8   : > { %v1746_v17 = vld [vmem:[#allocation12 + $0x78] ss:$20 sps:$4 sm:$0xff]   ;;  %v1747_v18 = vld [vmem:[#allocation12 + $0x80] ss:$20 sps:$4 sm:$0xff]   ;;  %v1753_v22 = vld [vmem:[#allocation12 + $0xa8] ss:$20 sps:$4 sm:$0xff]  }
  0xc9   : > { %v1748_v19 = vld [vmem:[#allocation12 + $0xa4] ss:$20 sps:$4 sm:$0xff]   ;;  %v1750_v20 = vld [vmem:[#allocation12 + $0xac] ss:$20 sps:$4 sm:$0xff]   ;;  %v1756_v24 = vld [vmem:[#allocation12 + $0xd4] ss:$20 sps:$4 sm:$0xff]  }
  0xca   : > { %732 = vmatpush1.bf16.msra.mxu0 %v1734_v9  ;;  %773 = vmatpush1.bf16.msra.mxu1 %v1735_v10  ;;  %v1752_v21 = vld [vmem:[#allocation12 + $0xa0] ss:$20 sps:$4 sm:$0xff]   ;;  %v1758_v25 = vld [vmem:[#allocation12 + $0xc8] ss:$20 sps:$4 sm:$0xff]   ;;  %v1759_v26 = vld [vmem:[#allocation12 + $0xd0] ss:$20 sps:$4 sm:$0xff]  }
  0xcb   : > { %733 = vmatprep.subr.bf16.mxu0 %v1736_v11  ;;  %774 = vmatprep.subr.bf16.mxu1 %v1738_v12  ;;  %v1754_v23 = vld [vmem:[#allocation12 + $0xcc] ss:$20 sps:$4 sm:$0xff]   ;;  %v1760_v27 = vld [vmem:[#allocation12 + $0xf4] ss:$20 sps:$4 sm:$0xff]   ;;  %v1762_v28 = vld [vmem:[#allocation12 + $0xfc] ss:$20 sps:$4 sm:$0xff]  }
  0xcc   : > { %v1764_v29 = vld [vmem:[#allocation12 + $0xf0] ss:$20 sps:$4 sm:$0xff]   ;;  %v1765_v30 = vld [vmem:[#allocation12 + $0xf8] ss:$20 sps:$4 sm:$0xff]   ;;  %v1771_v34 = vld [vmem:[#allocation12 + $0x120] ss:$20 sps:$4 sm:$0xff]  }
  0xcd   : > { %v1766_v31 = vld [vmem:[#allocation12 + $0x11c] ss:$20 sps:$4 sm:$0xff]   ;;  %v1768_v32 = vld [vmem:[#allocation12 + $0x124] ss:$20 sps:$4 sm:$0xff]   ;;  %v1772_v38 = vld [vmem:[#allocation10] ss:$20 sps:$4 sm:$0xff]  }
  0xce   : > { %734 = vmatpush1.bf16.msra.mxu0 %v1740_v13  ;;  %775 = vmatpush1.bf16.msra.mxu1 %v1741_v14  ;;  %v1770_v33 = vld [vmem:[#allocation12 + $0x118] ss:$20 sps:$4 sm:$0xff]   ;;  %v1775_v39 = vld [vmem:[#allocation12 + $0x10] ss:$20 sps:$4 sm:$0xff]   ;;  %v1776_v42 = vld [vmem:[#allocation10 + $0x28] ss:$20 sps:$4 sm:$0xff]  }
  0xcf   : > { %735 = vmatprep.subr.bf16.mxu0 %v1742_v15  ;;  %776 = vmatprep.subr.bf16.mxu1 %v1744_v16  ;;  %v422_v35 = vld [vmem:[#allocation2] sm:$0xff]  ;;  %v1778_v41 = vld [vmem:[#allocation10 + $0x2c] ss:$20 sps:$4 sm:$0xff]   ;;  %v1782_v44 = vld [vmem:[#allocation10 + $0x54] ss:$20 sps:$4 sm:$0xff]   ;;  %vm2149_vm0 = vmmov 0  }
  0xd0   : > { %v1774_v36 = vld [vmem:[#allocation10 + $0x4] ss:$20 sps:$4 sm:$0xff]   ;;  %v2452_v37 = vpack.c.bf16 %v422_v35, %v422_v35  ;;  %v1783_v46 = vld [vmem:[#allocation12 + $0x60] ss:$20 sps:$4 sm:$0xff]   ;;  %v1786_v47 = vld [vmem:[#allocation10 + $0x7c] ss:$20 sps:$4 sm:$0xff]  }
  0xd1   : > { %v1779_v43 = vld [vmem:[#allocation12 + $0x38] ss:$20 sps:$4 sm:$0xff]   ;;  %v1780_v45 = vld [vmem:[#allocation10 + $0x50] ss:$20 sps:$4 sm:$0xff]   ;;  %v1787_v49 = vld [vmem:[#allocation12 + $0x88] ss:$20 sps:$4 sm:$0xff]  }
  0xd2   : > { %736 = vmatpush1.bf16.msra.mxu0 %v1746_v17  ;;  %777 = vmatpush1.bf16.msra.mxu1 %v1747_v18  ;;  %v1784_v48 = vld [vmem:[#allocation10 + $0x78] ss:$20 sps:$4 sm:$0xff]   ;;  %v1788_v51 = vld [vmem:[#allocation10 + $0xa0] ss:$20 sps:$4 sm:$0xff]   ;;  %v1791_v52 = vld [vmem:[#allocation12 + $0xb0] ss:$20 sps:$4 sm:$0xff]  }
  0xd3   : > { %737 = vmatprep.subr.bf16.mxu0 %v1748_v19  ;;  %778 = vmatprep.subr.bf16.mxu1 %v1750_v20  ;;  %v1790_v50 = vld [vmem:[#allocation10 + $0xa4] ss:$20 sps:$4 sm:$0xff]   ;;  %v1794_v53 = vld [vmem:[#allocation10 + $0xcc] ss:$20 sps:$4 sm:$0xff]   ;;  %v1792_v54 = vld [vmem:[#allocation10 + $0xc8] ss:$20 sps:$4 sm:$0xff]  }
  0xd4   : > { %v1795_v55 = vld [vmem:[#allocation12 + $0xd8] ss:$20 sps:$4 sm:$0xff]   ;;  %v1798_v56 = vld [vmem:[#allocation10 + $0xf4] ss:$20 sps:$4 sm:$0xff]   ;;  %v1796_v57 = vld [vmem:[#allocation10 + $0xf0] ss:$20 sps:$4 sm:$0xff]  }
  0xd5   : > { %v1799_v58 = vld [vmem:[#allocation12 + $0x100] ss:$20 sps:$4 sm:$0xff]   ;;  %v1802_v59 = vld [vmem:[#allocation10 + $0x11c] ss:$20 sps:$4 sm:$0xff]   ;;  %v1800_v60 = vld [vmem:[#allocation10 + $0x118] ss:$20 sps:$4 sm:$0xff]  }
  0xd6   : > { %738 = vmatpush1.bf16.msra.mxu0 %v1752_v21  ;;  %779 = vmatpush1.bf16.msra.mxu1 %v1753_v22  ;;  %v1803_v61 = vld [vmem:[#allocation12 + $0x128] ss:$20 sps:$4 sm:$0xff]   ;;  %v1806_v62 = vld [vmem:[#allocation10 + $0xc] ss:$20 sps:$4 sm:$0xff]   ;;  %v1807_v1 = vld [vmem:[#allocation10 + $0x10] ss:$20 sps:$4 sm:$0xff]  }
  0xd7   : > { %739 = vmatprep.subr.bf16.mxu0 %v1754_v23  ;;  %780 = vmatprep.subr.bf16.mxu1 %v1756_v24  ;;  %v421_v63 = vld [vmem:[%s2432_s11] sm:$0xf]  ;;  %v1808_v3 = vld [vmem:[#allocation10 + $0x30] ss:$20 sps:$4 sm:$0xff]   ;;  %v1815_v8 = vld [vmem:[#allocation10 + $0x60] ss:$20 sps:$4 sm:$0xff]  }
  0xd8   : > { %v1804_v0 = vld [vmem:[#allocation10 + $0x8] ss:$20 sps:$4 sm:$0xff]   ;;  %v1811_v5 = vld [vmem:[#allocation10 + $0x38] ss:$20 sps:$4 sm:$0xff]   ;;  %v1816_v10 = vld [vmem:[#allocation10 + $0x80] ss:$20 sps:$4 sm:$0xff]  }
  0xd9   : > { %v1810_v2 = vld [vmem:[#allocation10 + $0x34] ss:$20 sps:$4 sm:$0xff]   ;;  %v1814_v6 = vld [vmem:[#allocation10 + $0x5c] ss:$20 sps:$4 sm:$0xff]   ;;  %v1812_v7 = vld [vmem:[#allocation10 + $0x58] ss:$20 sps:$4 sm:$0xff]  }
  0xda   : > { %740 = vmatpush1.bf16.msra.mxu0 %v1758_v25  ;;  %781 = vmatpush1.bf16.msra.mxu1 %v1759_v26  ;;  %v1818_v9 = vld [vmem:[#allocation10 + $0x84] ss:$20 sps:$4 sm:$0xff]   ;;  %v1819_v11 = vld [vmem:[#allocation10 + $0x88] ss:$20 sps:$4 sm:$0xff]   ;;  %v1822_v12 = vld [vmem:[#allocation10 + $0xac] ss:$20 sps:$4 sm:$0xff]  }
  0xdb   : > { %741 = vmatprep.subr.bf16.mxu0 %v1760_v27  ;;  %782 = vmatprep.subr.bf16.mxu1 %v1762_v28  ;;  %v1823_v13 = vld [vmem:[#allocation10 + $0xb0] ss:$20 sps:$4 sm:$0xff]   ;;  %v1826_v14 = vld [vmem:[#allocation10 + $0xd4] ss:$20 sps:$4 sm:$0xff]   ;;  %v1827_v16 = vld [vmem:[#allocation10 + $0xd8] ss:$20 sps:$4 sm:$0xff]  }
  0xdc   : > { %v1824_v15 = vld [vmem:[#allocation10 + $0xd0] ss:$20 sps:$4 sm:$0xff]   ;;  %v1828_v18 = vld [vmem:[#allocation10 + $0xf8] ss:$20 sps:$4 sm:$0xff]   ;;  %v1831_v19 = vld [vmem:[#allocation10 + $0x100] ss:$20 sps:$4 sm:$0xff]  }
  0xdd   : > { %v1830_v17 = vld [vmem:[#allocation10 + $0xfc] ss:$20 sps:$4 sm:$0xff]   ;;  %v1834_v20 = vld [vmem:[#allocation10 + $0x124] ss:$20 sps:$4 sm:$0xff]   ;;  %v1832_v21 = vld [vmem:[#allocation10 + $0x120] ss:$20 sps:$4 sm:$0xff]  }
  0xde   : > { %742 = vmatpush1.bf16.msra.mxu0 %v1764_v29  ;;  %783 = vmatpush1.bf16.msra.mxu1 %v1765_v30  ;;  %v1835_v22 = vld [vmem:[#allocation10 + $0x128] ss:$20 sps:$4 sm:$0xff]   ;;  %p1535_p11 = scmp.ne.s32.totalorder %s2130_s30, 7 }
  0xdf   : > { %743 = vmatprep.subr.bf16.mxu0 %v1766_v31  ;;  %784 = vmatprep.subr.bf16.mxu1 %v1768_v32  ;;  %v1183_v31 = vlaneseq  ;;  %v1181_v35 = vld [vmem:[%s2577_s5] sm:$0x1f] }
  0xe1   : > { %v1184_v32 = vshrl.u32 %v1183_v31, 7 }
  0xe2   : > { %744 = vmatpush1.bf16.msra.mxu0 %v1770_v33  ;;  %785 = vmatpush1.bf16.msra.mxu1 %v1771_v34 }
  0xe3   : > { %1562 = vmatprep.subr.bf16.mxu0 %v2148_v40  ;;  %1059 = vmatprep.subr.bf16.mxu1 %v1774_v36  ;;  %v1185_v33 = vsub.s32 0, %v1184_v32  ;;  %v1189_v34 = vsub.s32 1, %v1184_v32 }
  0xe5   : > { %762 = vmatmul.mubr.bf16.vlgmr.msra.gmra.mrb[0].mxu0 %v2452_v37  ;;  %803 = vmatmul.mubr.bf16.vlgmr.msra.gmra.mrb[0].mxu1 %v2452_v37 }
  0xe6   : > { %1563 = vmatpush3.bf16.msra.mxu0 %v1775_v39  ;;  %1060 = vmatpush1.bf16.msra.mxu1 %v1772_v38  ;;  %v1186_v38 = vrot.slane %v1181_v35, %v1185_v33  ;;  %v1190_v39 = vrot.slane %v1181_v35, %v1189_v34 }
  0xe7   : > { %1564 = vmatprep.subr.bf16.mxu0 %v2148_v40  ;;  %1061 = vmatprep.subr.bf16.mxu1 %v1778_v41 }
  0xe8   : > { %1578 = vmatprep.mubr.msk.bf16.mxu0 %vm2149_vm0, %v2148_v40  ;;  %1091 = vmatprep.mubr.bf16.mxu1 %v2147_v4 }
  0xea   : > { %1565 = vmatpush3.bf16.msra.mxu0 %v1779_v43  ;;  %1062 = vmatpush1.bf16.msra.mxu1 %v1776_v42 }
  0xeb   : > { %1566 = vmatprep.subr.bf16.mxu0 %v2148_v40  ;;  %1063 = vmatprep.subr.bf16.mxu1 %v1782_v44 }
  0xee   : > { %1567 = vmatpush3.bf16.msra.mxu0 %v1783_v46  ;;  %1064 = vmatpush1.bf16.msra.mxu1 %v1780_v45 }
  0xef   : > { %1568 = vmatprep.subr.bf16.mxu0 %v2148_v40  ;;  %1065 = vmatprep.subr.bf16.mxu1 %v1786_v47 }
  0xf2   : > { %1569 = vmatpush3.bf16.msra.mxu0 %v1787_v49  ;;  %1066 = vmatpush1.bf16.msra.mxu1 %v1784_v48 }
  0xf3   : > { %1570 = vmatprep.subr.bf16.mxu0 %v2148_v40  ;;  %1067 = vmatprep.subr.bf16.mxu1 %v1790_v50 }
  0xf6   : > { %1571 = vmatpush3.bf16.msra.mxu0 %v1791_v52  ;;  %1068 = vmatpush1.bf16.msra.mxu1 %v1788_v51 }
  0xf7   : > { %1572 = vmatprep.subr.bf16.mxu0 %v2148_v40  ;;  %1069 = vmatprep.subr.bf16.mxu1 %v1794_v53 }
  0xfa   : > { %1573 = vmatpush3.bf16.msra.mxu0 %v1795_v55  ;;  %1070 = vmatpush1.bf16.msra.mxu1 %v1792_v54 }
  0xfb   : > { %1574 = vmatprep.subr.bf16.mxu0 %v2148_v40  ;;  %1071 = vmatprep.subr.bf16.mxu1 %v1798_v56  ;;  %v1193_v56 = vsub.s32 2, %v1184_v32 }
  0xfe   : > { %1575 = vmatpush3.bf16.msra.mxu0 %v1799_v58  ;;  %1072 = vmatpush1.bf16.msra.mxu1 %v1796_v57  ;;  %v1201_v57 = vsub.s32 4, %v1184_v32  ;;  %v1197_v58 = vsub.s32 3, %v1184_v32 }
  0xff   : > { %1576 = vmatprep.subr.bf16.mxu0 %v2148_v40  ;;  %1073 = vmatprep.subr.bf16.mxu1 %v1802_v59  ;;  %v1194_v59 = vrot.slane %v1181_v35, %v1193_v56 }
 0x102   : > { %1577 = vmatpush3.bf16.msra.mxu0 %v1803_v61  ;;  %1074 = vmatpush1.bf16.msra.mxu1 %v1800_v60  ;;  %v1202_v60 = vrot.slane %v1181_v35, %v1201_v57 }
 0x103   : > { %1100 = vmatprep.subr.bf16.mxu0 %v1806_v62  ;;  %1582 = vmatprep.subr.bf16.mxu1 %v2148_v40 }
 0x105   : > { %1579 = vmatmul.mubr.bf16.vlgmr.msra.gmra.mrb[4].mxu0 %v2452_v37  ;;  %1092 = vmatmul.mubr.bf16.vlgmr.msra.gmra.mrb[4].mxu1 %v421_v63 }
 0x106   : > { %1101 = vmatpush1.bf16.msra.mxu0 %v1804_v0  ;;  %1583 = vmatpush3.bf16.msra.mxu1 %v1807_v1 }
 0x107   : > { %1102 = vmatprep.subr.bf16.mxu0 %v1810_v2  ;;  %1584 = vmatprep.subr.bf16.mxu1 %v2148_v40 }
 0x108   : > { %1132 = vmatprep.mubr.bf16.mxu0 %v2147_v4  ;;  %1598 = vmatprep.mubr.msk.bf16.mxu1 %vm2149_vm0, %v2148_v40  ;;  %v1820_v4 = vld [vmem:[#allocation10 + $0xa8] ss:$20 sps:$4 sm:$0xff]  }
 0x10a   : > { %1103 = vmatpush1.bf16.msra.mxu0 %v1808_v3  ;;  %1585 = vmatpush3.bf16.msra.mxu1 %v1811_v5 }
 0x10b   : > { %1104 = vmatprep.subr.bf16.mxu0 %v1814_v6  ;;  %1586 = vmatprep.subr.bf16.mxu1 %v2148_v40 }
 0x10e   : > { %1105 = vmatpush1.bf16.msra.mxu0 %v1812_v7  ;;  %1587 = vmatpush3.bf16.msra.mxu1 %v1815_v8 }
 0x10f   : > { %1106 = vmatprep.subr.bf16.mxu0 %v1818_v9  ;;  %1588 = vmatprep.subr.bf16.mxu1 %v2148_v40 }
 0x112   : > { %1107 = vmatpush1.bf16.msra.mxu0 %v1816_v10  ;;  %1589 = vmatpush3.bf16.msra.mxu1 %v1819_v11 }
 0x113   : > { %1108 = vmatprep.subr.bf16.mxu0 %v1822_v12  ;;  %1590 = vmatprep.subr.bf16.mxu1 %v2148_v40 }
 0x116   : > { %1109 = vmatpush1.bf16.msra.mxu0 %v1820_v4  ;;  %1591 = vmatpush3.bf16.msra.mxu1 %v1823_v13 }
 0x117   : > { %1110 = vmatprep.subr.bf16.mxu0 %v1826_v14  ;;  %1592 = vmatprep.subr.bf16.mxu1 %v2148_v40  ;;  %v423_v14 = vld [vmem:[#allocation3] sm:$0xff] }
 0x11a   : > { %1111 = vmatpush1.bf16.msra.mxu0 %v1824_v15  ;;  %1593 = vmatpush3.bf16.msra.mxu1 %v1827_v16 }
 0x11b   : > { %1112 = vmatprep.subr.bf16.mxu0 %v1830_v17  ;;  %1594 = vmatprep.subr.bf16.mxu1 %v2148_v40 }
 0x11e   : > { %1113 = vmatpush1.bf16.msra.mxu0 %v1828_v18  ;;  %1595 = vmatpush3.bf16.msra.mxu1 %v1831_v19 }
 0x11f   : > { %1114 = vmatprep.subr.bf16.mxu0 %v1834_v20  ;;  %1596 = vmatprep.subr.bf16.mxu1 %v2148_v40 }
 0x122   : > { %1115 = vmatpush1.bf16.msra.mxu0 %v1832_v21  ;;  %1597 = vmatpush3.bf16.msra.mxu1 %v1835_v22 }
 0x125   : > { %1133 = vmatmul.mubr.bf16.vlgmr.msra.gmra.mrb[8].mxu0 %v421_v63  ;;  %1599 = vmatmul.mubr.bf16.vlgmr.msra.gmra.mrb[8].mxu1 %v421_v63  ;;  %v1198_v63 = vrot.slane %v1181_v35, %v1197_v58 }
 0x1b8   : > { %v763_v23 = vpop.f32.mrb[0].mxu0  ;;  %v804_v24 = vpop.f32.mrb[0].mxu1 }
 0x1b9   : > { %v765_v25 = vpop.f32.mrb[1].mxu0  ;;  %v806_v26 = vpop.f32.mrb[1].mxu1 }
 0x1ba   : > { %v767_v27 = vpop.f32.mrb[2].mxu0  ;;  %v808_v28 = vpop.f32.mrb[2].mxu1 }
 0x1bb   : > { %v768_v29 = vpop.f32.mrb[3].mxu0  ;;  %v809_v30 = vpop.f32.mrb[3].mxu1 }
 0x1d8   : > { %v845_v36 = vpop.f32.mrb[4].mxu0  ;;  %v1093_v37 = vpop.f32.mrb[4].mxu1 }
 0x1d9   : > { %v1094_v40 = vadd.f32 %v1093_v37, %v763_v23  ;;  %v1580_v41 = vpop.f32.mrb[5].mxu0  ;;  %v1095_v42 = vpop.f32.mrb[5].mxu1 }
 0x1da   : > { %v1096_v43 = vadd.f32 %v1095_v42, %v765_v25  ;;  %v848_v44 = vpop.f32.mrb[6].mxu0  ;;  %v1097_v45 = vpop.f32.mrb[6].mxu1 }
 0x1db   : > { %v1581_v46 = vpop.f32.mrb[7].mxu0  ;;  %v1098_v47 = vpop.f32.mrb[7].mxu1  ;;  %v1208_v48 = vadd.f32 %v1186_v38, %v1094_v40 }
 0x1dc   : > { %v1209_v49 = vadd.f32 %v1190_v39, %v1096_v43 }
 0x1dd   : > { %v1532_v51 = vmul.f32 -1.442695, %v1208_v48 }
 0x1de   : > { %v1533_v50 = vmul.f32 -1.442695, %v1209_v49 }
 0x1e0   : > { %1836 = vpow2.f32 %v1533_v50 }
 0x1e1   : > { %1838 = vpow2.f32 %v1532_v51 }
 0x1ea   : > { %v1837_v52 = vpop.eup %1836 }
 0x1eb   : > { %v1839_v53 = vpop.eup %1838  ;;  %v1223_v54 = vadd.f32 1.0, %v1837_v52 }
 0x1ec   : > { %v1222_v55 = vadd.f32 1.0, %v1839_v53 }
 0x1ed   : > { %1840 = vrcp.f32 %v1223_v54 }
 0x1ee   : > { %1842 = vrcp.f32 %v1222_v55 }
 0x1f7   : > { %v1841_v4 = vpop.eup %1840 }
 0x1f8   : > { %v1134_v61 = vpop.f32.mrb[8].mxu0  ;;  %v1175_v62 = vpop.f32.mrb[8].mxu1  ;;  %v1232_v17 = vmul.f32 %v1841_v4, %v423_v14 }
 0x1f9   : > { %v1135_v0 = vadd.f32 %v1134_v61, %v804_v24  ;;  %v1176_v1 = vadd.f32 %v1175_v62, %v845_v36  ;;  %v1136_v2 = vpop.f32.mrb[9].mxu0  ;;  %v1600_v3 = vpop.f32.mrb[9].mxu1 }
 0x1fa   : > { %v1137_v5 = vadd.f32 %v1136_v2, %v806_v26  ;;  %v1138_v6 = vpop.f32.mrb[10].mxu0  ;;  %v1178_v7 = vpop.f32.mrb[10].mxu1 }
 0x1fb   : > { %v1210_v8 = vadd.f32 %v1194_v59, %v1135_v0  ;;  %v1212_v9 = vadd.f32 %v1202_v60, %v1176_v1  ;;  %v1139_v10 = vpop.f32.mrb[11].mxu0  ;;  %v1601_v11 = vpop.f32.mrb[11].mxu1 }
 0x1fc   : > { %v1211_v12 = vadd.f32 %v1198_v63, %v1137_v5  ;;  %v1843_v16 = vpop.eup %1842 }
 0x1fd   : > { %v1534_v13 = vmul.f32 -1.442695, %v1210_v8 }
 0x1fe   : > { %v1231_v15 = vmax.f32 %v1211_v12, %v1212_v9 }
 0x1ff   : > { %1844 = vpow2.f32 %v1534_v13 }
 0x200   : > { %v1233_v18 = vmul.f32 %v1843_v16, %v1231_v15 }
 0x202   : > { %v1234_v19 = vadd.f32 %v1233_v18, %v1232_v17 }
 0x204   : > { %1238 = vst [vmem:[#allocation3] sm:$0xff] %v1234_v19  ;;  %1846 = vtanh.f32 %v1234_v19  ;;  %1245 = vst [vmem:[#allocation16] sm:$0xff] (!%p1535_p11), %v1234_v19 }
 0x209   : > { %v1845_v20 = vpop.eup %1844 }
 0x20a   : > { %v1224_v21 = vadd.f32 1.0, %v1845_v20 }
 0x20c   : > { %1848 = vrcp.f32 %v1224_v21 }
 0x20e   : > { %v1847_v22 = vpop.eup %1846 }
 0x213   : > { %1243 = sbr.rel (%p1535_p11) target bundleno = 539 (0x21b), region = 72 }
 0x216   : > { %v1849_v23 = vpop.eup %1848 }
 0x217   : > { %v1236_v24 = vmul.f32 %v1849_v23, %v1847_v22 }
 0x219   : > { %1237 = vst [vmem:[#allocation2] sm:$0xff] %v1236_v24  ;;  %1239 = vst [vmem:[%s2447_s3] sm:$0xff] %v1236_v24 }
 0x21a   : > { %1244 = vst [vmem:[#allocation14] sm:$0xff] %v1236_v24 }
 0x21b PF: > { %s2150_s16 = smov [#allocation14]   ;;  %s1537_s1 = sshll.u32 %s2130_s30, 7 }
 0x21c   : > { %s1274_s24 = sshll.u32 %s2150_s16, 4  ;;  %p2612_p6 = scmp.ne.s32.totalorder %s2604_s14, 0  ;;  %s1275_s24 = int_to_ptr.vmem [resolvable:$true] %s1274_s24 }
 0x21d   : > { %s1992_s20 = scalar_lea.vmem %s1275_s24, 128  ;;  %p1999_p2 = scmp.lt.s32.totalorder %s1275_s24, %s1275_s24 }
 0x21e   : > { %p1993_p4 = scmp.ne.s32.totalorder %s1275_s24, %s1992_s20  ;;  %p2000_p7 = scmp.lt.s32.totalorder %s1992_s20, %s1992_s20 }
 0x220   : > { %p1994_p1 = pnand %p1993_p4, %p2612_p6  ;;  %p2001_p8 = por %p2000_p7, %p1999_p2 }
 0x222   : > { %p1995_p13 = pneg %p1994_p1 }
 0x224   : > { %p2002_p9 = pnand %p2001_p8, %p1995_p13 }
 0x226   : > { %2005 = shalt.err (!%p2002_p9)
}
 0x227   : > { %s2006_s21 = scalar_lea.hbm %s2579_s7, 128 }
 0x228   : > { %p2007_p3 = scmp.ne.s32.totalorder %s2579_s7, %s2006_s21  ;;  %p2012_p5 = scmp.lt.u32.totalorder %s2006_s21, %s2579_s7 }
 0x22a   : > { %p2008_p10 = pnand %p2007_p3, %p2612_p6 }
 0x22c   : > { %p2009_p0 = pneg %p2008_p10 }
 0x22e   : > { %p2014_p12 = pnand %p2012_p5, %p2009_p0 }
 0x230   : > { %2017 = shalt.err (!%p2014_p12)
}
 0x231   : > { %1622 = dma.vmem_to_hbm [thread:$0]  (%p2612_p6), %s1275_s24, 128, %s2579_s7, [#allocation15]  }
 0x232   : > { %s2507_s20 = scalar_lea.hbm %s2578_s6, %s1537_s1  ;;  %s1261_s18 = sshll.u32 %s2447_s3, 4  ;;  %s1262_s18 = int_to_ptr.vmem [resolvable:$true] %s1261_s18 }
 0x233   : > { %s1247_s17 = scalar_lea.sflag [#allocation6], %s2428_s4  ;;  %s2018_s21 = scalar_lea.vmem %s1262_s18, 128 }
 0x234   : > { %p2019_p11 = scmp.ne.s32.totalorder %s1262_s18, %s2018_s21  ;;  %p2613_p4 = scmp.ne.s32.totalorder %s2607_s19, 0 }
 0x235   : > { %s2151_s25 = smov [#allocation13]  }
 0x236   : > { %p2020_p1 = pnand %p2019_p11, %p2613_p4  ;;  %s2022_s23 = sshll.u32 %s2151_s25, 4  ;;  %s2023_s23 = int_to_ptr.vmem [resolvable:$false] %s2022_s23 }
 0x237   : > { %s2024_s30 = scalar_lea.vmem %s2023_s23, 256  ;;  %p2025_p2 = scmp.lt.s32.totalorder %s1262_s18, %s2023_s23 }
 0x238   : > { %p2021_p13 = pneg %p2020_p1  ;;  %p2026_p7 = scmp.lt.s32.totalorder %s2024_s30, %s2018_s21 }
 0x23a   : > { %p2027_p8 = por %p2026_p7, %p2025_p2 }
 0x23c   : > { %p2028_p9 = pnand %p2027_p8, %p2021_p13 }
 0x23e   : > { %2031 = shalt.err (!%p2028_p9)
}
 0x23f   : > { %s2032_s4 = scalar_lea.hbm %s2507_s20, 128  ;;  %s2036_s1 = scalar_lea.hbm %s2578_s6, 1024 }
 0x240   : > { %p2033_p3 = scmp.ne.s32.totalorder %s2507_s20, %s2032_s4  ;;  %p2037_p5 = scmp.lt.u32.totalorder %s2507_s20, %s2578_s6 }
 0x241   : > { %p2038_p12 = scmp.lt.u32.totalorder %s2036_s1, %s2032_s4  ;;  %p2040_p1 = scmp.lt.u32.totalorder %s2032_s4, %s2507_s20 }
 0x242   : > { %p2034_p10 = pnand %p2033_p3, %p2613_p4 }
 0x243   : > { %p2039_p11 = por %p2038_p12, %p2037_p5 }
 0x244   : > { %p2035_p0 = pneg %p2034_p10 }
 0x245   : > { %p2041_p13 = por %p2040_p1, %p2039_p11 }
 0x247   : > { %p2042_p2 = pnand %p2041_p13, %p2035_p0 }
 0x249   : > { %2045 = shalt.err (!%p2042_p2)
}
 0x24a   : > { %1620 = dma.vmem_to_hbm [thread:$0]  (%p2613_p4), %s1262_s18, 128, %s2507_s20, %s1247_s17  }
 0x24b   : > { %s2152_s12 = smov [#allocation16]  }
 0x24c   : > { %s1287_s13 = sshll.u32 %s2152_s12, 4  ;;  %s1288_s13 = int_to_ptr.vmem [resolvable:$true] %s1287_s13 }
 0x24d   : > { %s2046_s16 = scalar_lea.vmem %s1288_s13, 128  ;;  %p2053_p3 = scmp.lt.s32.totalorder %s1288_s13, %s1288_s13 }
 0x24e   : > { %p2047_p7 = scmp.ne.s32.totalorder %s1288_s13, %s2046_s16  ;;  %p2054_p10 = scmp.lt.s32.totalorder %s2046_s16, %s2046_s16 }
 0x250   : > { %p2048_p8 = pnand %p2047_p7, %p2612_p6  ;;  %p2055_p5 = por %p2054_p10, %p2053_p3 }
 0x252   : > { %p2049_p9 = pneg %p2048_p8 }
 0x254   : > { %p2056_p12 = pnand %p2055_p5, %p2049_p9 }
 0x256   : > { %2059 = shalt.err (!%p2056_p12)
}
 0x257   : > { %s2060_s19 = scalar_lea.hbm %s2580_s8, 128 }
 0x258   : > { %p2061_p4 = scmp.ne.s32.totalorder %s2580_s8, %s2060_s19  ;;  %p2066_p1 = scmp.lt.u32.totalorder %s2060_s19, %s2580_s8 }
 0x25a   : > { %p2062_p0 = pnand %p2061_p4, %p2612_p6 }
 0x25c   : > { %p2063_p11 = pneg %p2062_p0 }
 0x25e   : > { %p2068_p13 = pnand %p2066_p1, %p2063_p11 }
 0x260   : > { %2071 = shalt.err (!%p2068_p13)
}
 0x261   : > { %1624 = dma.vmem_to_hbm [thread:$0]  (%p2612_p6), %s1288_s13, 128, %s2580_s8, [#allocation15]  }
 0x262   : > { %2109 = dma.done.wait (%p2612_p6), [#allocation15], 256  }
 0x263   : > { %2111 = vsyncadd (%p2612_p6), [#allocation15], 4294967040 }
 0x264 PF: > { %p1664_p2 = scmp.ge.s32.totalorder %s2138_s10, 2  ;;  %s1307_s3 = sand.u32 1, %s2118_s27  }
 0x265   : > { %p2614_p7 = scmp.ne.s32.totalorder %s2608_s22, 0  ;;  %s1308_s24 = scalar_lea.sflag [#allocation6], %s1307_s3 }
 0x267   : > { %p1648_p8 = pnand %p1664_p2, %p2614_p7 }
 0x269   : > { %2113 = dma.done.wait (!%p1648_p8), %s1308_s24, 128  }
 0x26a   : > { %2115 = vsyncadd (!%p1648_p8), %s1308_s24, 4294967168  ;;  %s28_s10 = sadd.s32 1, %s2138_s10   ;;  %s2615_s27 = smov %s2122_s28 }
 0x26b   : > { %p25_p9 = scmp.ge.s32.totalorder %s28_s10, 10   ;;  %s2616_s28 = smov %s2126_s29 }
 0x26c   : > { %s2617_s29 = smov %s2378_s15  ;;  %s2618_s30 = smov %s2134_s9 }
 0x26d   : > { %s2619_s9 = smov %s2621_s26  ;;  %27 = sbr.rel (!%p25_p9) target bundleno = 14 (0xe), region = 133 }
 0x274   :  { %1313 = vsyncpa [#allocation5], 1 }
 0x275   :  { %1315 = vsyncpa [#allocation5 + $0x1], 1 }
 0x276   :  { %1316 = vsyncpa [#allocation8], 1 }
 0x277   :  { %1317 = vsyncpa [#allocation11], 1 }
 0x278   :  { %1318 = vsyncpa [#allocation6], 1 }
 0x279   :  { %1320 = vsyncpa [#allocation6 + $0x1], 1 }
 0x27a   :  { %1321 = vsyncpa [#allocation15], 1 }

</bundles_post_ra>
